<compile_context>
chip_gen: v7x
topology: tpu7x:2x2x1
jax: 0.10.0
libtpu: 0.0.40
codegen_flags: <defaults>
</compile_context>

<pallas_src>
import functools

import jax
import jax.numpy as jnp
from jax.experimental import pallas as pl
from jax.experimental.pallas import tpu as pltpu


def _round_up(x, m):
    return ((x + m - 1) // m) * m


def _contrastive_loss_kernel(z1r_ref, z2r_ref, z1c_ref, z2c_ref, out_ref,
                             den1_acc, den2_acc, *, col_pad_correction):
    """Grid = (row_tiles, col_tiles) over the (padded) batch axis.

    Inputs are already L2-normalized with 1/sqrt(T) folded in, so every dot
    product is sim/T directly.  For row tile i we accumulate, over column
    tiles j, the per-row softmax denominators of rows i (from z1) and rows
    i+B (from z2).  On the last column tile we emit one "pair loss" per row:
        l_i = -2 * (z1_i . z2_i)/T + log(den1_i) + log(den2_i)
    whose sum over i equals the sum of all 2B per-row InfoNCE losses.
    """
    j = pl.program_id(1)

    @pl.when(j == 0)
    def _init():
        den1_acc[...] = jnp.zeros_like(den1_acc)
        den2_acc[...] = jnp.zeros_like(den2_acc)

    z1r = z1r_ref[...]               # [tm, Dp]  pre-normalized query rows
    z2r = z2r_ref[...]               # [tm, Dp]
    z1c = z1c_ref[...]               # [Dp, tn]  pre-transposed key columns
    z2c = z2c_ref[...]               # [Dp, tn]

    # Plain NN matmuls: contract the lane (embedding) axis of the rows with
    # the sublane axis of the pre-transposed columns.
    dn = (((1,), (0,)), ((), ()))
    e11 = jnp.exp(jax.lax.dot_general(z1r, z1c, dn,
                                      preferred_element_type=jnp.float32))
    e12 = jnp.exp(jax.lax.dot_general(z1r, z2c, dn,
                                      preferred_element_type=jnp.float32))
    e21 = jnp.exp(jax.lax.dot_general(z2r, z1c, dn,
                                      preferred_element_type=jnp.float32))
    e22 = jnp.exp(jax.lax.dot_general(z2r, z2c, dn,
                                      preferred_element_type=jnp.float32))

    # Fused cross-lane reductions: one XLU reduce per accumulator per step.
    den1_acc[...] += jnp.sum(e11 + e12, axis=1, keepdims=True)
    den2_acc[...] += jnp.sum(e21 + e22, axis=1, keepdims=True)

    @pl.when(j == pl.num_programs(1) - 1)
    def _finalize():
        # Row tiles are resident across j, so these per-row-tile terms are
        # computed exactly once per row tile (not per grid step).
        self1 = jnp.exp(jnp.sum(z1r * z1r, axis=1, keepdims=True))
        self2 = jnp.exp(jnp.sum(z2r * z2r, axis=1, keepdims=True))
        pos = jnp.sum(z1r * z2r, axis=1, keepdims=True)
        # Remove the diagonal self-similarity and the exp(0) = 1 contribution
        # of every zero-padded key column (an exact constant).
        den1 = den1_acc[...] - self1 - col_pad_correction
        den2 = den2_acc[...] - self2 - col_pad_correction
        out_ref[...] = -2.0 * pos + jnp.log(den1) + jnp.log(den2)


def _choose_tiles(batch, dp):
    """Pick row tile tm (multiple of 8) and column tile tn (multiple of 128)."""
    tm = min(512, _round_up(max(batch, 1), 8))
    tn = min(256, _round_up(max(batch, 1), 128))

    # Double-buffered f32 input streams (2 row + 2 col) plus the four exp
    # temporaries must stay well under the scoped-VMEM limit (v7x: 64 MiB
    # physical, 32 MiB default scoped).
    def footprint(tm_, tn_):
        return 16 * dp * (tm_ + tn_) + 16 * tm_ * tn_

    budget = 24 * 1024 * 1024
    while footprint(tm, tn) > budget and (tm > 8 or tn > 128):
        if tm > 8 and (tm >= tn or tn <= 128):
            tm = max(8, _round_up(tm // 2, 8))
        else:
            tn = max(128, _round_up(tn // 2, 128))

    # Keep >= 2 row tiles so the "parallel" row axis can be split across
    # TensorCores (v7x megacore) whenever the batch allows it.
    if -(-batch // tm) < 2 and batch > 8:
        tm = max(8, _round_up((batch + 1) // 2, 8))
    return tm, tn


def contrastive_loss(proj_1, proj_2, temperature=0.5):
    """proj_1, proj_2: [batch, embedding_dim] — returns scalar InfoNCE loss."""
    assert proj_1.shape == proj_2.shape and proj_1.ndim == 2
    B, D = proj_1.shape

    eps = 1e-12                                    # matches F.normalize default
    inv_sqrt_t = 1.0 / float(temperature) ** 0.5

    def _norm_scale(p):
        # F.normalize(p=2, dim=1) with the 1/sqrt(T) temperature folded in,
        # done ONCE per array here (not per grid step inside the kernel).
        p = p.astype(jnp.float32)
        ss = jnp.sum(p * p, axis=1, keepdims=True)
        return p * (jax.lax.rsqrt(jnp.maximum(ss, eps * eps)) * inv_sqrt_t)

    z1 = _norm_scale(proj_1)
    z2 = _norm_scale(proj_2)

    # Zero-pad the embedding dim to a lane multiple (neutral for all dots).
    Dp = _round_up(max(D, 1), 128)
    if Dp != D:
        z1 = jnp.pad(z1, ((0, 0), (0, Dp - D)))
        z2 = jnp.pad(z2, ((0, 0), (0, Dp - D)))

    tm, tn = _choose_tiles(B, Dp)
    Br = _round_up(B, tm)            # padded batch for the row (query) streams
    Bc = _round_up(B, tn)            # padded batch for the col (key) streams
    gi, gj = Br // tm, Bc // tn

    z1r = jnp.pad(z1, ((0, Br - B), (0, 0)))
    z2r = jnp.pad(z2, ((0, Br - B), (0, 0)))
    # Column operands pre-transposed to [Dp, Bc] so the kernel's matmuls are
    # plain NN (no per-step transposes inside the kernel).
    z1c = jnp.transpose(jnp.pad(z1, ((0, Bc - B), (0, 0))))
    z2c = jnp.transpose(jnp.pad(z2, ((0, Bc - B), (0, 0))))

    # Each zero-padded key column adds exactly exp(0) = 1 to every denominator
    # (once via the z1 stream and once via the z2 stream).
    col_pad_correction = float(2 * (Bc - B))

    kernel = functools.partial(_contrastive_loss_kernel,
                               col_pad_correction=col_pad_correction)

    row_spec = pl.BlockSpec((tm, Dp), lambda i, j: (i, 0))
    col_spec = pl.BlockSpec((Dp, tn), lambda i, j: (0, j))

    vmem_est = 16 * Dp * (tm + tn) + 16 * tm * tn + (1 << 20)
    vmem_limit = int(min(48 * 1024 * 1024, max(32 * 1024 * 1024, vmem_est)))

    pair_losses = pl.pallas_call(
        kernel,
        out_shape=jax.ShapeDtypeStruct((Br, 1), jnp.float32),
        grid_spec=pltpu.PrefetchScalarGridSpec(
            num_scalar_prefetch=0,
            grid=(gi, gj),
            in_specs=[row_spec, row_spec, col_spec, col_spec],
            out_specs=pl.BlockSpec((tm, 1), lambda i, j: (i, 0)),
            scratch_shapes=[pltpu.VMEM((tm, 1), jnp.float32),
                            pltpu.VMEM((tm, 1), jnp.float32)],
        ),
        compiler_params=pltpu.CompilerParams(
            dimension_semantics=("parallel", "arbitrary"),
            vmem_limit_bytes=vmem_limit),
    )(z1r, z2r, z1c, z2c)

    # Tiny final reduction (B elements) done outside the kernel.
    return jnp.sum(pair_losses[:B, 0]) / (2.0 * B)


def _reference_loss(proj_1, proj_2, temperature=0.5):
    """Pure-JAX reference mirroring the PyTorch module exactly."""
    B = proj_1.shape[0]
    eps = 1e-12
    z1 = proj_1 / jnp.maximum(jnp.linalg.norm(proj_1, axis=1, keepdims=True), eps)
    z2 = proj_2 / jnp.maximum(jnp.linalg.norm(proj_2, axis=1, keepdims=True), eps)
    z = jnp.concatenate([z1, z2], axis=0)
    sim = z @ z.T
    sim_ij = jnp.diagonal(sim, offset=B)
    sim_ji = jnp.diagonal(sim, offset=-B)
    positives = jnp.concatenate([sim_ij, sim_ji], axis=0)
    nominator = jnp.exp(positives / temperature)
    mask = 1.0 - jnp.eye(2 * B)
    denominator = mask * jnp.exp(sim / temperature)
    all_losses = -jnp.log(nominator / jnp.sum(denominator, axis=1))
    return jnp.sum(all_losses) / (2 * B)


if __name__ == "__main__":
    batch_size = 8
    embedding_dim = 32
    temperature = 0.5

    key = jax.random.PRNGKey(0)
    k1, k2 = jax.random.split(key)
    proj_1 = jax.random.normal(k1, (batch_size, embedding_dim), dtype=jnp.float32)
    proj_2 = jax.random.normal(k2, (batch_size, embedding_dim), dtype=jnp.float32)

    loss = contrastive_loss(proj_1, proj_2, temperature)
    loss = jax.block_until_ready(loss)

    ref = _reference_loss(proj_1, proj_2, temperature)
    assert jnp.allclose(loss, ref, rtol=1e-5, atol=1e-5), (loss, ref)

    print("KERNEL_OK")
</pallas_src>

<mosaic_0001>
module attributes {stable_mosaic.version = 11 : i64} {
  func.func @_contrastive_loss_kernel(%arg0: i32, %arg1: i32, %arg2: memref<8x128xf32, #tpu.memory_space<vmem>>, %arg3: memref<8x128xf32, #tpu.memory_space<vmem>>, %arg4: memref<128x128xf32, #tpu.memory_space<vmem>>, %arg5: memref<128x128xf32, #tpu.memory_space<vmem>>, %arg6: memref<8x1xf32, #tpu.memory_space<vmem>>, %arg7: memref<8x1xf32, #tpu.memory_space<vmem>>, %arg8: memref<8x1xf32, #tpu.memory_space<vmem>>) attributes {dimension_semantics = [#tpu.dimension_semantics<parallel>, #tpu.dimension_semantics<arbitrary>], iteration_bounds = array<i64: 1, 1>, scalar_prefetch = 0 : i64, scratch_operands = 2 : i64, tpu.core_type = #tpu.core_type<tc>, window_params = [{transform_indices = @transform_0, window_bounds = array<i64: 8, 128>}, {transform_indices = @transform_1, window_bounds = array<i64: 8, 128>}, {transform_indices = @transform_2, window_bounds = array<i64: 128, 128>}, {transform_indices = @transform_3, window_bounds = array<i64: 128, 128>}, {transform_indices = @transform_4, window_bounds = array<i64: 8, 1>}]} {
    %c0_i32 = arith.constant 0 : i32
    %0 = arith.cmpi eq, %arg1, %c0_i32 : i32
    %1 = arith.extui %0 : i1 to i32
    %c0_i32_0 = arith.constant 0 : i32
    %2 = arith.cmpi ne, %1, %c0_i32_0 : i32
    scf.if %2 {
      %cst_23 = arith.constant 0.000000e+00 : f32
      %30 = vector.broadcast %cst_23 : f32 to vector<8x1xf32>
      %c0_24 = arith.constant 0 : index
      %c0_25 = arith.constant 0 : index
      %31 = vector.load %arg7[%c0_24, %c0_25] : memref<8x1xf32, #tpu.memory_space<vmem>>, vector<8x1xf32>
      tpu.vector_store %arg7[%c0_24, %c0_25], %30 {strides = array<i32>} : memref<8x1xf32, #tpu.memory_space<vmem>>, vector<8x1xf32>,
      %cst_26 = arith.constant 0.000000e+00 : f32
      %32 = vector.broadcast %cst_26 : f32 to vector<8x1xf32>
      %c0_27 = arith.constant 0 : index
      %c0_28 = arith.constant 0 : index
      %33 = vector.load %arg8[%c0_27, %c0_28] : memref<8x1xf32, #tpu.memory_space<vmem>>, vector<8x1xf32>
      tpu.vector_store %arg8[%c0_27, %c0_28], %32 {strides = array<i32>} : memref<8x1xf32, #tpu.memory_space<vmem>>, vector<8x1xf32>,
    } else {
    }
    %c0 = arith.constant 0 : index
    %c0_1 = arith.constant 0 : index
    %3 = vector.load %arg2[%c0, %c0_1] : memref<8x128xf32, #tpu.memory_space<vmem>>, vector<8x128xf32>
    %c0_2 = arith.constant 0 : index
    %c0_3 = arith.constant 0 : index
    %4 = vector.load %arg3[%c0_2, %c0_3] : memref<8x128xf32, #tpu.memory_space<vmem>>, vector<8x128xf32>
    %c0_4 = arith.constant 0 : index
    %c0_5 = arith.constant 0 : index
    %5 = vector.load %arg4[%c0_4, %c0_5] : memref<128x128xf32, #tpu.memory_space<vmem>>, vector<128x128xf32>
    %c0_6 = arith.constant 0 : index
    %c0_7 = arith.constant 0 : index
    %6 = vector.load %arg5[%c0_6, %c0_7] : memref<128x128xf32, #tpu.memory_space<vmem>>, vector<128x128xf32>
    %cst = arith.constant dense<0.000000e+00> : vector<8x128xf32>
    %7 = tpu.matmul %3, %5, %cst {dimension_numbers = #tpu.dot_dimension_numbers<[1], [0], [0], [1], [0, 0, 1, 1], [], []>} : vector<8x128xf32>, vector<128x128xf32>, vector<8x128xf32> -> vector<8x128xf32>
    %8 = math.exp %7 : vector<8x128xf32>
    %cst_8 = arith.constant dense<0.000000e+00> : vector<8x128xf32>
    %9 = tpu.matmul %3, %6, %cst_8 {dimension_numbers = #tpu.dot_dimension_numbers<[1], [0], [0], [1], [0, 0, 1, 1], [], []>} : vector<8x128xf32>, vector<128x128xf32>, vector<8x128xf32> -> vector<8x128xf32>
    %10 = math.exp %9 : vector<8x128xf32>
    %cst_9 = arith.constant dense<0.000000e+00> : vector<8x128xf32>
    %11 = tpu.matmul %4, %5, %cst_9 {dimension_numbers = #tpu.dot_dimension_numbers<[1], [0], [0], [1], [0, 0, 1, 1], [], []>} : vector<8x128xf32>, vector<128x128xf32>, vector<8x128xf32> -> vector<8x128xf32>
    %12 = math.exp %11 : vector<8x128xf32>
    %cst_10 = arith.constant dense<0.000000e+00> : vector<8x128xf32>
    %13 = tpu.matmul %4, %6, %cst_10 {dimension_numbers = #tpu.dot_dimension_numbers<[1], [0], [0], [1], [0, 0, 1, 1], [], []>} : vector<8x128xf32>, vector<128x128xf32>, vector<8x128xf32> -> vector<8x128xf32>
    %14 = math.exp %13 : vector<8x128xf32>
    %c0_11 = arith.constant 0 : index
    %c0_12 = arith.constant 0 : index
    %15 = vector.load %arg7[%c0_11, %c0_12] : memref<8x1xf32, #tpu.memory_space<vmem>>, vector<8x1xf32>
    %16 = arith.addf %8, %10 : vector<8x128xf32>
    %cst_13 = arith.constant dense<0.000000e+00> : vector<8xf32>
    %17 = vector.multi_reduction <add>, %16, %cst_13 [1] : vector<8x128xf32> to vector<8xf32>
    %18 = vector.shape_cast %17 : vector<8xf32> to vector<8x1xf32>
    %19 = arith.addf %15, %18 : vector<8x1xf32>
    %c0_14 = arith.constant 0 : index
    %c0_15 = arith.constant 0 : index
    %20 = vector.load %arg7[%c0_14, %c0_15] : memref<8x1xf32, #tpu.memory_space<vmem>>, vector<8x1xf32>
    tpu.vector_store %arg7[%c0_14, %c0_15], %19 {strides = array<i32>} : memref<8x1xf32, #tpu.memory_space<vmem>>, vector<8x1xf32>,
    %c0_16 = arith.constant 0 : index
    %c0_17 = arith.constant 0 : index
    %21 = vector.load %arg8[%c0_16, %c0_17] : memref<8x1xf32, #tpu.memory_space<vmem>>, vector<8x1xf32>
    %22 = arith.addf %12, %14 : vector<8x128xf32>
    %cst_18 = arith.constant dense<0.000000e+00> : vector<8xf32>
    %23 = vector.multi_reduction <add>, %22, %cst_18 [1] : vector<8x128xf32> to vector<8xf32>
    %24 = vector.shape_cast %23 : vector<8xf32> to vector<8x1xf32>
    %25 = arith.addf %21, %24 : vector<8x1xf32>
    %c0_19 = arith.constant 0 : index
    %c0_20 = arith.constant 0 : index
    %26 = vector.load %arg8[%c0_19, %c0_20] : memref<8x1xf32, #tpu.memory_space<vmem>>, vector<8x1xf32>
    tpu.vector_store %arg8[%c0_19, %c0_20], %25 {strides = array<i32>} : memref<8x1xf32, #tpu.memory_space<vmem>>, vector<8x1xf32>,
    %c0_i32_21 = arith.constant 0 : i32
    %27 = arith.cmpi eq, %arg1, %c0_i32_21 : i32
    %28 = arith.extui %27 : i1 to i32
    %c0_i32_22 = arith.constant 0 : i32
    %29 = arith.cmpi ne, %28, %c0_i32_22 : i32
    scf.if %29 {
      %30 = arith.mulf %3, %3 : vector<8x128xf32>
      %cst_23 = arith.constant dense<0.000000e+00> : vector<8xf32>
      %31 = vector.multi_reduction <add>, %30, %cst_23 [1] : vector<8x128xf32> to vector<8xf32>
      %32 = vector.shape_cast %31 : vector<8xf32> to vector<8x1xf32>
      %33 = math.exp %32 : vector<8x1xf32>
      %34 = arith.mulf %4, %4 : vector<8x128xf32>
      %cst_24 = arith.constant dense<0.000000e+00> : vector<8xf32>
      %35 = vector.multi_reduction <add>, %34, %cst_24 [1] : vector<8x128xf32> to vector<8xf32>
      %36 = vector.shape_cast %35 : vector<8xf32> to vector<8x1xf32>
      %37 = math.exp %36 : vector<8x1xf32>
      %38 = arith.mulf %3, %4 : vector<8x128xf32>
      %cst_25 = arith.constant dense<0.000000e+00> : vector<8xf32>
      %39 = vector.multi_reduction <add>, %38, %cst_25 [1] : vector<8x128xf32> to vector<8xf32>
      %40 = vector.shape_cast %39 : vector<8xf32> to vector<8x1xf32>
      %c0_26 = arith.constant 0 : index
      %c0_27 = arith.constant 0 : index
      %41 = vector.load %arg7[%c0_26, %c0_27] : memref<8x1xf32, #tpu.memory_space<vmem>>, vector<8x1xf32>
      %42 = arith.subf %41, %33 : vector<8x1xf32>
      %cst_28 = arith.constant 2.400000e+02 : f32
      %43 = vector.broadcast %cst_28 : f32 to vector<8x1xf32>
      %44 = arith.subf %42, %43 : vector<8x1xf32>
      %c0_29 = arith.constant 0 : index
      %c0_30 = arith.constant 0 : index
      %45 = vector.load %arg8[%c0_29, %c0_30] : memref<8x1xf32, #tpu.memory_space<vmem>>, vector<8x1xf32>
      %46 = arith.subf %45, %37 : vector<8x1xf32>
      %cst_31 = arith.constant 2.400000e+02 : f32
      %47 = vector.broadcast %cst_31 : f32 to vector<8x1xf32>
      %48 = arith.subf %46, %47 : vector<8x1xf32>
      %cst_32 = arith.constant -2.000000e+00 : f32
      %49 = vector.broadcast %cst_32 : f32 to vector<8x1xf32>
      %50 = arith.mulf %49, %40 : vector<8x1xf32>
      %51 = math.log %44 : vector<8x1xf32>
      %52 = arith.addf %50, %51 : vector<8x1xf32>
      %53 = math.log %48 : vector<8x1xf32>
      %54 = arith.addf %52, %53 : vector<8x1xf32>
      %c0_33 = arith.constant 0 : index
      %c0_34 = arith.constant 0 : index
      %55 = vector.load %arg6[%c0_33, %c0_34] : memref<8x1xf32, #tpu.memory_space<vmem>>, vector<8x1xf32>
      tpu.vector_store %arg6[%c0_33, %c0_34], %54 {strides = array<i32>} : memref<8x1xf32, #tpu.memory_space<vmem>>, vector<8x1xf32>,
    } else {
    }
    return
  }
  func.func @transform_0(%arg0: i32, %arg1: i32) -> (i32, i32) {
    %c0_i32 = arith.constant 0 : i32
    %c0_i32_0 = arith.constant 0 : i32
    return %arg0, %c0_i32 : i32, i32
  }
  func.func @transform_1(%arg0: i32, %arg1: i32) -> (i32, i32) {
    %c0_i32 = arith.constant 0 : i32
    %c0_i32_0 = arith.constant 0 : i32
    return %arg0, %c0_i32 : i32, i32
  }
  func.func @transform_2(%arg0: i32, %arg1: i32) -> (i32, i32) {
    %c0_i32 = arith.constant 0 : i32
    %c0_i32_0 = arith.constant 0 : i32
    return %c0_i32, %arg1 : i32, i32
  }
  func.func @transform_3(%arg0: i32, %arg1: i32) -> (i32, i32) {
    %c0_i32 = arith.constant 0 : i32
    %c0_i32_0 = arith.constant 0 : i32
    return %c0_i32, %arg1 : i32, i32
  }
  func.func @transform_4(%arg0: i32, %arg1: i32) -> (i32, i32) {
    %c0_i32 = arith.constant 0 : i32
    %c0_i32_0 = arith.constant 0 : i32
    return %arg0, %c0_i32 : i32, i32
  }
}

</mosaic_0001>

<bundles_post_ra>
// kernel: tpu_custom_call.1
= control target key start
LH: loop header
LB: loop body
LE: loop exit
PB: predicated region body
PF: predicated region fallthrough
CT: control target
= control target key end

     0   :  { %9 = vsyncpa [#allocation5], 0  ;;  %s1036_s0 = inlined_call_operand.hbm [shape: f32[8,128], index: 0, kind: input, shape index: {}]   ;;  %s1037_s1 = inlined_call_operand.hbm [shape: f32[8,128], index: 1, kind: input, shape index: {}]   ;;  %s1038_s2 = inlined_call_operand.hbm [shape: f32[128,128], index: 2, kind: input, shape index: {}]   ;;  %s1039_s3 = inlined_call_operand.hbm [shape: f32[128,128], index: 3, kind: input, shape index: {}]   ;;  %s1040_s4 = inlined_call_operand.vmem [shape: f32[8,1], index: 4, kind: output, shape index: {}]  }
   0x1   :  { %10 = vsyncpa [#allocation7], 0 }
   0x2   :  { %11 = vsyncpa [#allocation10], 0  ;;  %s872_s15 = smov [#allocation6]   ;;  %s873_s17 = smov [#allocation4]  }
   0x3   :  { %s28_s16 = sshll.u32 %s872_s15, 4  ;;  %s18_s18 = sshll.u32 %s873_s17, 4  ;;  %s29_s16 = int_to_ptr.vmem [resolvable:$true] %s28_s16  ;;  %s19_s18 = int_to_ptr.vmem [resolvable:$true] %s18_s18 }
   0x4   :  { %s778_s21 = scalar_lea.hbm %s1037_s1, 128 }
   0x5   :  { %p779_p0 = scmp.ne.s32.totalorder %s1037_s1, %s778_s21  ;;  %p782_p1 = scmp.lt.u32.totalorder %s778_s21, %s1037_s1 }
   0x7   :  { %p784_p2 = pnand %p782_p1, %p779_p0 }
   0x9   :  { %787 = shalt.err (!%p784_p2)
}
   0xa   :  { %s788_s26 = scalar_lea.vmem %s29_s16, 128  ;;  %p793_p4 = scmp.lt.s32.totalorder %s29_s16, %s29_s16 }
   0xb   :  { %p789_p3 = scmp.ne.s32.totalorder %s29_s16, %s788_s26  ;;  %p794_p5 = scmp.lt.s32.totalorder %s788_s26, %s788_s26 }
   0xd   :  { %p795_p6 = por %p794_p5, %p793_p4 }
   0xf   :  { %p796_p7 = pnand %p795_p6, %p789_p3 }
  0x11   :  { %799 = shalt.err (!%p796_p7)
}
  0x12   :  { %31 = dma.hbm_to_vmem [thread:$0]  %s1037_s1, 128, %s29_s16, [#allocation7]  }
  0x13   :  { %s800_s5 = scalar_lea.hbm %s1036_s0, 128 }
  0x14   :  { %p801_p8 = scmp.ne.s32.totalorder %s1036_s0, %s800_s5  ;;  %p804_p9 = scmp.lt.u32.totalorder %s800_s5, %s1036_s0 }
  0x16   :  { %p806_p10 = pnand %p804_p9, %p801_p8 }
  0x18   :  { %809 = shalt.err (!%p806_p10)
}
  0x19   :  { %s810_s10 = scalar_lea.vmem %s19_s18, 128  ;;  %p815_p12 = scmp.lt.s32.totalorder %s19_s18, %s19_s18 }
  0x1a   :  { %p811_p11 = scmp.ne.s32.totalorder %s19_s18, %s810_s10  ;;  %p816_p13 = scmp.lt.s32.totalorder %s810_s10, %s810_s10 }
  0x1c   :  { %p817_p0 = por %p816_p13, %p815_p12 }
  0x1e   :  { %p818_p1 = pnand %p817_p0, %p811_p11 }
  0x20   :  { %821 = shalt.err (!%p818_p1)
}
  0x21   :  { %21 = dma.hbm_to_vmem [thread:$0]  %s1036_s0, 128, %s19_s18, [#allocation5]  }
  0x22   :  { %s874_s12 = smov [#allocation8]   ;;  %s822_s16 = scalar_lea.hbm %s1038_s2, 2048 }
  0x23   :  { %s37_s13 = sshll.u32 %s874_s12, 4  ;;  %p823_p2 = scmp.ne.s32.totalorder %s1038_s2, %s822_s16  ;;  %s38_s13 = int_to_ptr.vmem [resolvable:$true] %s37_s13 }
  0x24   :  { %p826_p3 = scmp.lt.u32.totalorder %s822_s16, %s1038_s2 }
  0x26   :  { %p828_p4 = pnand %p826_p3, %p823_p2 }
  0x28   :  { %831 = shalt.err (!%p828_p4)
}
  0x29   :  { %s832_s22 = scalar_lea.vmem %s38_s13, 2048  ;;  %p837_p6 = scmp.lt.s32.totalorder %s38_s13, %s38_s13 }
  0x2a   :  { %p833_p5 = scmp.ne.s32.totalorder %s38_s13, %s832_s22  ;;  %p838_p7 = scmp.lt.s32.totalorder %s832_s22, %s832_s22 }
  0x2c   :  { %p839_p8 = por %p838_p7, %p837_p6 }
  0x2e   :  { %p840_p9 = pnand %p839_p8, %p833_p5 }
  0x30   :  { %843 = shalt.err (!%p840_p9)
}
  0x31   :  { %s875_s0 = smov 128   ;;  %s876_s18 = smov 8  }
  0x32   :  { %43 = dma.hbm_to_vmem [thread:$0]  %s1038_s2, 2048, %s38_s13, [#allocation7], %s875_s0, %s875_s0, %s876_s18  }
  0x33   :  { %s877_s25 = smov [#allocation9]   ;;  %s844_s29 = scalar_lea.hbm %s1039_s3, 2048 }
  0x34   :  { %s49_s26 = sshll.u32 %s877_s25, 4  ;;  %p845_p10 = scmp.ne.s32.totalorder %s1039_s3, %s844_s29  ;;  %s50_s26 = int_to_ptr.vmem [resolvable:$true] %s49_s26 }
  0x35   :  { %p848_p11 = scmp.lt.u32.totalorder %s844_s29, %s1039_s3 }
  0x37   :  { %p850_p12 = pnand %p848_p11, %p845_p10 }
  0x39   :  { %853 = shalt.err (!%p850_p12)
}
  0x3a   :  { %s854_s8 = scalar_lea.vmem %s50_s26, 2048  ;;  %p859_p0 = scmp.lt.s32.totalorder %s50_s26, %s50_s26 }
  0x3b   :  { %p855_p13 = scmp.ne.s32.totalorder %s50_s26, %s854_s8  ;;  %p860_p1 = scmp.lt.s32.totalorder %s854_s8, %s854_s8 }
  0x3d   :  { %p861_p2 = por %p860_p1, %p859_p0 }
  0x3f   :  { %p862_p3 = pnand %p861_p2, %p855_p13 }
  0x41   :  { %865 = shalt.err (!%p862_p3)
}
  0x42   :  { %55 = dma.hbm_to_vmem [thread:$0]  %s1039_s3, 2048, %s50_s26, [#allocation10], %s875_s0, %s875_s0, %s876_s18  }
  0x43   :  { %866 = dma.done.wait [#allocation5], 128  }
  0x44   :  { %867 = vsyncadd [#allocation5], 4294967168 }
  0x45   :  { %868 = dma.done.wait [#allocation7], 2176  }
  0x46   :  { %869 = vsyncadd [#allocation7], 4294965120 }
  0x47   :  { %870 = dma.done.wait [#allocation10], 2048  }
  0x48   :  { %871 = vsyncadd [#allocation10], 4294965248  ;;  %v878_v0 = vmov 0.0|0.0   ;;  %vm879_vm0 = vmmov 0   ;;  %v880_v1 = vmov 0.0   ;;  %v77_v2 = vld [vmem:[#allocation8] sm:$0xff] }
  0x49   :  { %657 = vmatprep.subr.bf16.mxu0 %v878_v0  ;;  %681 = vmatprep.subr.bf16.mxu1 %v878_v0  ;;  %v78_v3 = vld [vmem:[#allocation8 + $0x8] sm:$0xff]  ;;  %v93_v4 = vld [vmem:[#allocation9] sm:$0xff]  ;;  %v79_v7 = vld [vmem:[#allocation8 + $0x10] sm:$0xff]  ;;  %vm72_vm1 = vcmask 7168  }
  0x4a   :  { %549 = vmatprep.mubr.msk.f32.mxu0 %vm879_vm0, %v880_v1  ;;  %584 = vmatprep.mubr.msk.f32.mxu1 %vm879_vm0, %v880_v1  ;;  %v960_v5 = vpack.c.bf16 %v78_v3, %v77_v2  ;;  %v94_v6 = vld [vmem:[#allocation9 + $0x8] sm:$0xff]  ;;  %v80_v8 = vld [vmem:[#allocation8 + $0x18] sm:$0xff]  ;;  %v95_v10 = vld [vmem:[#allocation9 + $0x10] sm:$0xff]  ;;  %73 = vst.msk [vmem:[#allocation2] sm:$0xff] %vm72_vm1, %v880_v1 }
  0x4b   :  { %v962_v9 = vpack.c.bf16 %v94_v6, %v93_v4  ;;  %v96_v11 = vld [vmem:[#allocation9 + $0x18] sm:$0xff]  ;;  %v965_v12 = vpack.c.bf16 %v80_v8, %v79_v7  ;;  %v81_v14 = vld [vmem:[#allocation8 + $0x20] sm:$0xff]  ;;  %v82_v15 = vld [vmem:[#allocation8 + $0x28] sm:$0xff]  ;;  %74 = vst.msk [vmem:[#allocation3] sm:$0xff] %vm72_vm1, %v880_v1 }
  0x4c   :  { %659 = vmatpush3.bf16.msra.mxu0 %v960_v5  ;;  %v969_v13 = vpack.c.bf16 %v96_v11, %v95_v10  ;;  %v97_v16 = vld [vmem:[#allocation9 + $0x20] sm:$0xff]  ;;  %v98_v17 = vld [vmem:[#allocation9 + $0x28] sm:$0xff]  ;;  %v973_v18 = vpack.c.bf16 %v82_v15, %v81_v14  ;;  %v83_v20 = vld [vmem:[#allocation8 + $0x30] sm:$0xff] }
  0x4d   :  { %683 = vmatpush3.bf16.msra.mxu1 %v962_v9  ;;  %660 = vmatprep.subr.bf16.mxu0 %v878_v0  ;;  %v977_v19 = vpack.c.bf16 %v98_v17, %v97_v16  ;;  %v84_v21 = vld [vmem:[#allocation8 + $0x38] sm:$0xff]  ;;  %v99_v22 = vld [vmem:[#allocation9 + $0x30] sm:$0xff]  ;;  %v85_v26 = vld [vmem:[#allocation8 + $0x40] sm:$0xff] }
  0x4e   :  { %684 = vmatprep.subr.bf16.mxu1 %v878_v0  ;;  %v100_v23 = vld [vmem:[#allocation9 + $0x38] sm:$0xff]  ;;  %v981_v24 = vpack.c.bf16 %v84_v21, %v83_v20  ;;  %v86_v27 = vld [vmem:[#allocation8 + $0x48] sm:$0xff]  ;;  %v101_v28 = vld [vmem:[#allocation9 + $0x40] sm:$0xff] }
  0x4f   :  { %v985_v25 = vpack.c.bf16 %v100_v23, %v99_v22  ;;  %v102_v29 = vld [vmem:[#allocation9 + $0x48] sm:$0xff]  ;;  %v670_v30 = vpack.c.bf16 %v86_v27, %v85_v26  ;;  %v87_v32 = vld [vmem:[#allocation8 + $0x50] sm:$0xff]  ;;  %v88_v33 = vld [vmem:[#allocation8 + $0x58] sm:$0xff] }
  0x50   :  { %662 = vmatpush3.bf16.msra.mxu0 %v965_v12  ;;  %v694_v31 = vpack.c.bf16 %v102_v29, %v101_v28  ;;  %v103_v34 = vld [vmem:[#allocation9 + $0x50] sm:$0xff]  ;;  %v104_v35 = vld [vmem:[#allocation9 + $0x58] sm:$0xff]  ;;  %v673_v36 = vpack.c.bf16 %v88_v33, %v87_v32  ;;  %v89_v38 = vld [vmem:[#allocation8 + $0x60] sm:$0xff] }
  0x51   :  { %686 = vmatpush3.bf16.msra.mxu1 %v969_v13  ;;  %663 = vmatprep.subr.bf16.mxu0 %v878_v0  ;;  %v697_v37 = vpack.c.bf16 %v104_v35, %v103_v34  ;;  %v90_v39 = vld [vmem:[#allocation8 + $0x68] sm:$0xff]  ;;  %v105_v40 = vld [vmem:[#allocation9 + $0x60] sm:$0xff]  ;;  %v91_v44 = vld [vmem:[#allocation8 + $0x70] sm:$0xff] }
  0x52   :  { %687 = vmatprep.subr.bf16.mxu1 %v878_v0  ;;  %v106_v41 = vld [vmem:[#allocation9 + $0x68] sm:$0xff]  ;;  %v676_v42 = vpack.c.bf16 %v90_v39, %v89_v38  ;;  %v92_v45 = vld [vmem:[#allocation8 + $0x78] sm:$0xff]  ;;  %v107_v46 = vld [vmem:[#allocation9 + $0x70] sm:$0xff] }
  0x53   :  { %v700_v43 = vpack.c.bf16 %v106_v41, %v105_v40  ;;  %v108_v47 = vld [vmem:[#allocation9 + $0x78] sm:$0xff]  ;;  %v679_v48 = vpack.c.bf16 %v92_v45, %v91_v44  ;;  %v75_v50 = vld [vmem:[#allocation4] sm:$0xff] }
  0x54   :  { %665 = vmatpush3.bf16.msra.mxu0 %v973_v18  ;;  %v703_v49 = vpack.c.bf16 %v108_v47, %v107_v46  ;;  %v76_v51 = vld [vmem:[#allocation6] sm:$0xff]  ;;  %v413_v52 = vmul.f32 %v75_v50, %v75_v50 }
  0x55   :  { %689 = vmatpush3.bf16.msra.mxu1 %v977_v19  ;;  %666 = vmatprep.subr.bf16.mxu0 %v878_v0  ;;  %v418_v53 = vmul.f32 %v76_v51, %v76_v51  ;;  %v423_v54 = vmul.f32 %v76_v51, %v75_v50 }
  0x56   :  { %690 = vmatprep.subr.bf16.mxu1 %v878_v0  ;;  %414 = vadd.xlane.f32.xlu0 %v413_v52 }
  0x58   :  { %668 = vmatpush3.bf16.msra.mxu0 %v981_v24 }
  0x59   :  { %692 = vmatpush3.bf16.msra.mxu1 %v985_v25  ;;  %669 = vmatprep.subr.bf16.mxu0 %v878_v0 }
  0x5a   :  { %693 = vmatprep.subr.bf16.mxu1 %v878_v0  ;;  %419 = vadd.xlane.f32.xlu0 %v418_v53 }
  0x5c   :  { %671 = vmatpush3.bf16.msra.mxu0 %v670_v30 }
  0x5d   :  { %695 = vmatpush3.bf16.msra.mxu1 %v694_v31  ;;  %672 = vmatprep.subr.bf16.mxu0 %v878_v0 }
  0x5e   :  { %696 = vmatprep.subr.bf16.mxu1 %v878_v0  ;;  %424 = vadd.xlane.f32.xlu0 %v423_v54 }
  0x60   :  { %674 = vmatpush3.bf16.msra.mxu0 %v673_v36 }
  0x61   :  { %698 = vmatpush3.bf16.msra.mxu1 %v697_v37  ;;  %675 = vmatprep.subr.bf16.mxu0 %v878_v0 }
  0x62   :  { %699 = vmatprep.subr.bf16.mxu1 %v878_v0 }
  0x64   :  { %677 = vmatpush3.bf16.msra.mxu0 %v676_v42 }
  0x65   :  { %701 = vmatpush3.bf16.msra.mxu1 %v700_v43  ;;  %678 = vmatprep.subr.bf16.mxu0 %v878_v0 }
  0x66   :  { %702 = vmatprep.subr.bf16.mxu1 %v878_v0 }
  0x68   :  { %680 = vmatpush3.bf16.msra.mxu0 %v679_v48 }
  0x69   :  { %704 = vmatpush3.bf16.msra.mxu1 %v703_v49  ;;  %705 = vmatprep.subr.bf16.mxu0 %v878_v0 }
  0x6a   :  { %729 = vmatprep.subr.bf16.mxu1 %v878_v0 }
  0x6b   :  { %550 = vmatmul.mubr.f32.vlgmr.msra.gmra.mrb[0].mxu0 %v75_v50 }
  0x6c   :  { %585 = vmatmul.mubr.f32.vlgmr.msra.gmra.mrb[0].mxu1 %v75_v50  ;;  %707 = vmatpush3.bf16.msra.mxu0 %v960_v5 }
  0x6d   :  { %731 = vmatpush3.bf16.msra.mxu1 %v962_v9  ;;  %708 = vmatprep.subr.bf16.mxu0 %v878_v0  ;;  %v397_v9 = vld [vmem:[#allocation2] sm:$0xff] }
  0x6e   :  { %732 = vmatprep.subr.bf16.mxu1 %v878_v0  ;;  %619 = vmatprep.mubr.msk.f32.mxu0 %vm879_vm0, %v880_v1 }
  0x6f   :  { %654 = vmatprep.mubr.msk.f32.mxu1 %vm879_vm0, %v880_v1 }
  0x70   :  { %710 = vmatpush3.bf16.msra.mxu0 %v965_v12 }
  0x71   :  { %734 = vmatpush3.bf16.msra.mxu1 %v969_v13  ;;  %711 = vmatprep.subr.bf16.mxu0 %v878_v0 }
  0x72   :  { %735 = vmatprep.subr.bf16.mxu1 %v878_v0 }
  0x74   :  { %713 = vmatpush3.bf16.msra.mxu0 %v973_v18  ;;  %v404_v18 = vld [vmem:[#allocation3] sm:$0xff] }
  0x75   :  { %737 = vmatpush3.bf16.msra.mxu1 %v977_v19  ;;  %714 = vmatprep.subr.bf16.mxu0 %v878_v0 }
  0x76   :  { %738 = vmatprep.subr.bf16.mxu1 %v878_v0 }
  0x78   :  { %716 = vmatpush3.bf16.msra.mxu0 %v981_v24 }
  0x79   :  { %740 = vmatpush3.bf16.msra.mxu1 %v985_v25  ;;  %717 = vmatprep.subr.bf16.mxu0 %v878_v0 }
  0x7a   :  { %741 = vmatprep.subr.bf16.mxu1 %v878_v0 }
  0x7c   :  { %719 = vmatpush3.bf16.msra.mxu0 %v670_v30 }
  0x7d   :  { %743 = vmatpush3.bf16.msra.mxu1 %v694_v31  ;;  %720 = vmatprep.subr.bf16.mxu0 %v878_v0 }
  0x7e   :  { %744 = vmatprep.subr.bf16.mxu1 %v878_v0 }
  0x80   :  { %722 = vmatpush3.bf16.msra.mxu0 %v673_v36 }
  0x81   :  { %746 = vmatpush3.bf16.msra.mxu1 %v697_v37  ;;  %723 = vmatprep.subr.bf16.mxu0 %v878_v0 }
  0x82   :  { %747 = vmatprep.subr.bf16.mxu1 %v878_v0 }
  0x84   :  { %725 = vmatpush3.bf16.msra.mxu0 %v676_v42 }
  0x85   :  { %749 = vmatpush3.bf16.msra.mxu1 %v700_v43  ;;  %726 = vmatprep.subr.bf16.mxu0 %v878_v0 }
  0x86   :  { %750 = vmatprep.subr.bf16.mxu1 %v878_v0 }
  0x88   :  { %728 = vmatpush3.bf16.msra.mxu0 %v679_v48 }
  0x89   :  { %752 = vmatpush3.bf16.msra.mxu1 %v703_v49 }
  0x8b   :  { %620 = vmatmul.mubr.f32.vlgmr.msra.gmra.mrb[2].mxu0 %v76_v51 }
  0x8c   :  { %655 = vmatmul.mubr.f32.vlgmr.msra.gmra.mrb[2].mxu1 %v76_v51 }
  0xe3   :  { %v415_v12 = vpop.xlane.xlu0 %414 }
  0xe4   :  { %v416_v13 = vmul.f32 1.442695, %v415_v12 }
  0xe7   :  { %v420_v14 = vpop.xlane.xlu0 %419 }
  0xe8   :  { %v421_v15 = vmul.f32 1.442695, %v420_v14 }
  0xeb   :  { %v425_v28 = vpop.xlane.xlu0 %424 }
  0xec   :  { %v432_v29 = vmul.f32 -2.0, %v425_v28 }
 0x13e   :  { %v175_v55 = vpop.f32.mrb[0].mxu0 }
 0x13f   :  { %v179_v56 = vmul.f32 1.442695, %v175_v55  ;;  %v247_v57 = vpop.f32.mrb[0].mxu1  ;;  %v551_v58 = vpop.f32.mrb[1].mxu0 }
 0x140   :  { %v251_v59 = vmul.f32 1.442695, %v247_v57  ;;  %v586_v60 = vpop.f32.mrb[1].mxu1 }
 0x141   :  { %762 = vpow2.f32 %v179_v56 }
 0x142   :  { %764 = vpow2.f32 %v251_v59 }
 0x14b   :  { %v763_v61 = vpop.eup %762 }
 0x14c   :  { %v765_v62 = vpop.eup %764 }
 0x14d   :  { %v398_v63 = vadd.f32 %v765_v62, %v763_v61 }
 0x14f   :  { %399 = vadd.xlane.f32.xlu1 %v398_v63 }
 0x15e   :  { %v319_v0 = vpop.f32.mrb[2].mxu0 }
 0x15f   :  { %v323_v2 = vmul.f32 1.442695, %v319_v0  ;;  %v391_v3 = vpop.f32.mrb[2].mxu1  ;;  %v621_v4 = vpop.f32.mrb[3].mxu0 }
 0x160   :  { %v395_v5 = vmul.f32 1.442695, %v391_v3  ;;  %v656_v6 = vpop.f32.mrb[3].mxu1 }
 0x161   :  { %766 = vpow2.f32 %v323_v2 }
 0x162   :  { %768 = vpow2.f32 %v395_v5 }
 0x163   :  { %770 = vpow2.f32 %v416_v13 }
 0x164   :  { %772 = vpow2.f32 %v421_v15 }
 0x16b   :  { %v767_v1 = vpop.eup %766 }
 0x16c   :  { %v769_v7 = vpop.eup %768 }
 0x16d   :  { %v405_v8 = vadd.f32 %v769_v7, %v767_v1  ;;  %v771_v16 = vpop.eup %770 }
 0x16e   :  { %v773_v23 = vpop.eup %772 }
 0x16f   :  { %406 = vadd.xlane.f32.xlu1 %v405_v8 }
 0x1dc   :  { %v400_v10 = vpop.xlane.xlu1 %399 }
 0x1dd   :  { %v401_v11 = vadd.f32 %v400_v10, %v397_v9 }
 0x1df   :  { %403 = vst.msk [vmem:[#allocation2] sm:$0xff] %vm72_vm1, %v401_v11 }
 0x1e6   :  { %v426_v17 = vld [vmem:[#allocation2] sm:$0xff] }
 0x1e7   :  { %v427_v20 = vsub.f32 %v426_v17, %v771_v16 }
 0x1e9   :  { %v447_v22 = vadd.f32 -240.0, %v427_v20 }
 0x1eb   :  { %774 = vlog2.f32 %v447_v22 }
 0x1f5   :  { %v775_v27 = vpop.eup %774 }
 0x1f6   :  { %v434_v30 = vmul.f32 0.6931472, %v775_v27 }
 0x1f8   :  { %v435_v32 = vadd.f32 %v434_v30, %v432_v29 }
 0x1fc   :  { %v407_v19 = vpop.xlane.xlu1 %406 }
 0x1fd   :  { %v408_v21 = vadd.f32 %v407_v19, %v404_v18 }
 0x1ff   :  { %409 = vst.msk [vmem:[#allocation3] sm:$0xff] %vm72_vm1, %v408_v21 }
 0x206   :  { %v429_v24 = vld [vmem:[#allocation3] sm:$0xff] }
 0x207   :  { %v430_v25 = vsub.f32 %v429_v24, %v773_v23 }
 0x209   :  { %v448_v26 = vadd.f32 -240.0, %v430_v25 }
 0x20b   :  { %776 = vlog2.f32 %v448_v26 }
 0x215   :  { %v777_v31 = vpop.eup %776 }
 0x216   :  { %v437_v33 = vmul.f32 0.6931472, %v777_v31 }
 0x218   :  { %v438_v34 = vadd.f32 %v437_v33, %v435_v32 }
 0x21a   :  { %439 = vst.msk [vmem:[%s1040_s4] sm:$0xff] %vm72_vm1, %v438_v34 }
 0x21b   :  { %444 = vsyncpa [#allocation5], 1 }
 0x21c   :  { %445 = vsyncpa [#allocation7], 1 }
 0x21d   :  { %446 = vsyncpa [#allocation10], 1 }

</bundles_post_ra>
